<compile_context>
chip_gen: v5e
topology: v5e:2x2
jax: 0.10.0
libtpu: 0.0.40
codegen_flags: <defaults>
</compile_context>

<pallas_src>
import functools

import jax
import jax.numpy as jnp
from jax import lax
from jax.experimental import pallas as pl
from jax.experimental.pallas import tpu as pltpu

NUM_CLASSES = 10


def _nce_kernel(n_ref, pred_ref, labels_ref, out_ref, acc_ref, *,
                tile, blocks_per_core):
    step = pl.program_id(1)

    @pl.when(step == 0)
    def _():
        acc_ref[...] = jnp.zeros_like(acc_ref)

    logits = pred_ref[...].astype(jnp.float32)        # (C, T) lane-dense
    labels = labels_ref[...]                          # (1, T) int32
    c, t = logits.shape

    # Numerically stable per-sample (per-lane) log-softmax statistics.
    col_max = jnp.max(logits, axis=0, keepdims=True)                # (1, T)
    shifted = logits - col_max                                      # (C, T)
    sum_exp = jnp.sum(jnp.exp(shifted), axis=0, keepdims=True)      # (1, T)
    log_sum_exp = jnp.log(sum_exp)                                  # (1, T)

    # One-hot selection of the true-class shifted logit (iota compare).
    row_ids = lax.broadcasted_iota(jnp.int32, (c, t), 0)            # (C, T)
    onehot = row_ids == labels                                      # (C, T)
    shifted_true = jnp.sum(jnp.where(onehot, shifted, 0.0),
                           axis=0, keepdims=True)                   # (1, T)
    sum_shifted = jnp.sum(shifted, axis=0, keepdims=True)           # (1, T)

    # numerator   = -log_softmax[true]    = log_sum_exp - shifted_true
    # denominator = -sum_j log_softmax_j  = C*log_sum_exp - sum_shifted
    numer = log_sum_exp - shifted_true
    denom = jnp.float32(c) * log_sum_exp - sum_shifted
    nce = numer / denom                                             # exact

    # Mask samples beyond the true batch size BEFORE accumulation
    # (handles the unpadded ragged last block and the clamped duplicate
    #  block of the second core when the block count is odd).
    gblock = pl.program_id(0) * blocks_per_core + step
    col = gblock * tile + lax.broadcasted_iota(jnp.int32, (1, t), 1)
    acc_ref[...] += jnp.where(col < n_ref[0], nce, 0.0)             # (1, T)

    @pl.when(step == pl.num_programs(1) - 1)
    def _():
        total = jnp.sum(acc_ref[...])                               # scalar
        r = lax.broadcasted_iota(jnp.int32, (8, 128), 0)
        l = lax.broadcasted_iota(jnp.int32, (8, 128), 1)
        out_ref[...] = jnp.where((r == 0) & (l == 0), total, 0.0)


def normalized_cross_entropy(pred, labels, *, num_classes=None, tile_n=32768,
                             n_valid=None, num_cores=2,
                             pred_class_major=False):
    """pred: (N, C) logits (any float dtype); labels: (N,) int. Returns scalar mean NCE."""
    if pred_class_major:
        c, n = pred.shape
        pred_t = pred
    else:
        n, c = pred.shape
        # TODO(synk): ideally the producer emits (C, N) logits so this extra
        # full HBM read+write disappears (then call with pred_class_major=True).
        pred_t = jnp.transpose(pred)
    if num_classes is not None:
        assert num_classes == c

    labels_row = labels.astype(jnp.int32).reshape(1, n)
    n_arr = jnp.asarray([n if n_valid is None else n_valid], dtype=jnp.int32)

    if n <= tile_n:
        tile = n                       # full-extent lane block is always legal
    else:
        tile = tile_n
        assert tile % 128 == 0, "tile_n must be a multiple of 128"

    nblocks = pl.cdiv(n, tile)
    bpc = pl.cdiv(nblocks, num_cores)  # blocks per core
    grid = (num_cores, bpc)
    last_block = nblocks - 1

    def in_map(core, step, n_ref):
        # Clamp so the (possibly) extra block of the last core re-reads a valid
        # block; its contribution is zeroed by the in-kernel col < n_valid mask.
        return (0, jnp.minimum(core * bpc + step, last_block))

    def out_map(core, step, n_ref):
        return (core, 0)

    # VMEM budget: double-buffered pred (<=16 padded sublanes) + labels + acc.
    est_vmem = tile * (2 * 16 * 4 + 2 * 8 * 4 + 8 * 4) + (2 << 20)
    vmem_limit = int(min(max(est_vmem, 32 << 20), 120 << 20))

    kernel = functools.partial(_nce_kernel, tile=tile, blocks_per_core=bpc)
    partials = pl.pallas_call(
        kernel,
        out_shape=jax.ShapeDtypeStruct((num_cores * 8, 128), jnp.float32),
        grid_spec=pltpu.PrefetchScalarGridSpec(
            num_scalar_prefetch=1,
            grid=grid,
            in_specs=[
                pl.BlockSpec((c, tile), in_map),
                pl.BlockSpec((1, tile), in_map),
            ],
            out_specs=pl.BlockSpec((8, 128), out_map),
            scratch_shapes=[pltpu.VMEM((1, tile), jnp.float32)],
        ),
        compiler_params=pltpu.CompilerParams(
            dimension_semantics=("parallel", "arbitrary"),
            vmem_limit_bytes=vmem_limit,
        ),
        cost_estimate=pl.CostEstimate(
            flops=10 * n * c,
            transcendentals=n * c + n,
            bytes_accessed=n * c * pred.dtype.itemsize + n * 4
                           + num_cores * 8 * 128 * 4,
        ),
    )(n_arr, pred_t, labels_row)

    return jnp.sum(partials) / n_arr[0].astype(jnp.float32)


def _reference(pred, labels, num_classes):
    # Plain-JAX mirror of the PyTorch NormalizedCrossEntropy forward.
    log_sm = jax.nn.log_softmax(pred.astype(jnp.float32), axis=1)
    oh = jax.nn.one_hot(labels, num_classes, dtype=jnp.float32)
    nce = -jnp.sum(oh * log_sm, axis=1) / (-jnp.sum(log_sm, axis=1))
    return jnp.mean(nce)


if __name__ == "__main__":
    key = jax.random.PRNGKey(0)
    k1, k2, k3, k4 = jax.random.split(key, 4)

    # Small single-block case (batch=16, classes=10).
    n1 = 16
    pred1 = jax.random.normal(k1, (n1, NUM_CLASSES), dtype=jnp.float32)
    labels1 = jax.random.randint(k2, (n1,), 0, NUM_CLASSES, dtype=jnp.int32)
    loss1 = jax.block_until_ready(normalized_cross_entropy(pred1, labels1))
    ref1 = _reference(pred1, labels1, NUM_CLASSES)
    assert jnp.allclose(loss1, ref1, atol=1e-5, rtol=1e-5), (loss1, ref1)

    # Multi-block ragged case: exercises the 2-core grid, the lane-vector
    # accumulator and the unpadded (masked) last tile.
    n2 = 300
    pred2 = jax.random.normal(k3, (n2, NUM_CLASSES), dtype=jnp.float32)
    labels2 = jax.random.randint(k4, (n2,), 0, NUM_CLASSES, dtype=jnp.int32)
    loss2 = jax.block_until_ready(
        normalized_cross_entropy(pred2, labels2, tile_n=128))
    ref2 = _reference(pred2, labels2, NUM_CLASSES)
    assert jnp.allclose(loss2, ref2, atol=1e-5, rtol=1e-5), (loss2, ref2)

    print("KERNEL_OK")
</pallas_src>

<mosaic_0001>
module attributes {stable_mosaic.version = 11 : i64} {
  func.func @_nce_kernel(%arg0: i32, %arg1: i32, %arg2: memref<1xi32, #tpu.memory_space<smem>>, %arg3: memref<10x16xf32, #tpu.memory_space<vmem>>, %arg4: memref<1x16xi32, #tpu.memory_space<vmem>>, %arg5: memref<8x128xf32, #tpu.memory_space<vmem>>, %arg6: memref<1x16xf32, #tpu.memory_space<vmem>>) attributes {dimension_semantics = [#tpu.dimension_semantics<parallel>, #tpu.dimension_semantics<arbitrary>], iteration_bounds = array<i64: 2, 1>, scalar_prefetch = 1 : i64, scratch_operands = 1 : i64, tpu.core_type = #tpu.core_type<tc>, window_params = [{transform_indices = @transform_0, window_bounds = array<i64: 10, 16>}, {transform_indices = @transform_1, window_bounds = array<i64: 1, 16>}, {transform_indices = @transform_2, window_bounds = array<i64: 8, 128>}]} {
    %c0_i32 = arith.constant 0 : i32
    %0 = arith.cmpi eq, %arg1, %c0_i32 : i32
    %1 = arith.extui %0 : i1 to i32
    %c0_i32_0 = arith.constant 0 : i32
    %2 = arith.cmpi ne, %1, %c0_i32_0 : i32
    scf.if %2 {
      %cst_17 = arith.constant 0.000000e+00 : f32
      %44 = vector.broadcast %cst_17 : f32 to vector<1x16xf32>
      %c0_18 = arith.constant 0 : index
      %c0_19 = arith.constant 0 : index
      %45 = vector.load %arg6[%c0_18, %c0_19] : memref<1x16xf32, #tpu.memory_space<vmem>>, vector<1x16xf32>
      tpu.vector_store %arg6[%c0_18, %c0_19], %44 {strides = array<i32>} : memref<1x16xf32, #tpu.memory_space<vmem>>, vector<1x16xf32>,
    } else {
    }
    %c0 = arith.constant 0 : index
    %c0_1 = arith.constant 0 : index
    %3 = vector.load %arg3[%c0, %c0_1] : memref<10x16xf32, #tpu.memory_space<vmem>>, vector<10x16xf32>
    %c0_2 = arith.constant 0 : index
    %c0_3 = arith.constant 0 : index
    %4 = vector.load %arg4[%c0_2, %c0_3] : memref<1x16xi32, #tpu.memory_space<vmem>>, vector<1x16xi32>
    %cst = arith.constant dense<0xFF800000> : vector<16xf32>
    %5 = vector.multi_reduction <maximumf>, %3, %cst [0] : vector<10x16xf32> to vector<16xf32>
    %6 = vector.shape_cast %5 : vector<16xf32> to vector<1x16xf32>
    %7 = vector.broadcast %6 : vector<1x16xf32> to vector<10x16xf32>
    %8 = arith.subf %3, %7 : vector<10x16xf32>
    %9 = math.exp %8 : vector<10x16xf32>
    %cst_4 = arith.constant dense<0.000000e+00> : vector<16xf32>
    %10 = vector.multi_reduction <add>, %9, %cst_4 [0] : vector<10x16xf32> to vector<16xf32>
    %11 = vector.shape_cast %10 : vector<16xf32> to vector<1x16xf32>
    %12 = math.log %11 : vector<1x16xf32>
    %13 = tpu.iota {dimensions = array<i32: 0>} : vector<10x16xi32>
    %14 = vector.broadcast %4 : vector<1x16xi32> to vector<10x16xi32>
    %15 = arith.cmpi eq, %13, %14 : vector<10x16xi32>
    %cst_5 = arith.constant 0.000000e+00 : f32
    %16 = vector.broadcast %cst_5 : f32 to vector<10x16xf32>
    %17 = arith.select %15, %8, %16 : vector<10x16xi1>, vector<10x16xf32>
    %cst_6 = arith.constant dense<0.000000e+00> : vector<16xf32>
    %18 = vector.multi_reduction <add>, %17, %cst_6 [0] : vector<10x16xf32> to vector<16xf32>
    %19 = vector.shape_cast %18 : vector<16xf32> to vector<1x16xf32>
    %cst_7 = arith.constant dense<0.000000e+00> : vector<16xf32>
    %20 = vector.multi_reduction <add>, %8, %cst_7 [0] : vector<10x16xf32> to vector<16xf32>
    %21 = vector.shape_cast %20 : vector<16xf32> to vector<1x16xf32>
    %22 = arith.subf %12, %19 : vector<1x16xf32>
    %cst_8 = arith.constant 1.000000e+01 : f32
    %23 = vector.broadcast %cst_8 : f32 to vector<1x16xf32>
    %24 = arith.mulf %23, %12 : vector<1x16xf32>
    %25 = arith.subf %24, %21 : vector<1x16xf32>
    %26 = arith.divf %22, %25 : vector<1x16xf32>
    %c1_i32 = arith.constant 1 : i32
    %27 = arith.muli %arg0, %c1_i32 : i32
    %28 = arith.addi %27, %arg1 : i32
    %c16_i32 = arith.constant 16 : i32
    %29 = arith.muli %28, %c16_i32 : i32
    %30 = tpu.iota {dimensions = array<i32: 1>} : vector<1x16xi32>
    %31 = vector.broadcast %29 : i32 to vector<1x16xi32>
    %32 = arith.addi %31, %30 : vector<1x16xi32>
    %c0_9 = arith.constant 0 : index
    %c0_10 = arith.constant 0 : index
    %33 = vector.load %arg6[%c0_9, %c0_10] : memref<1x16xf32, #tpu.memory_space<vmem>>, vector<1x16xf32>
    %c0_11 = arith.constant 0 : index
    %34 = memref.load %arg2[%c0_11] : memref<1xi32, #tpu.memory_space<smem>>
    %35 = vector.broadcast %34 : i32 to vector<1x16xi32>
    %36 = arith.cmpi slt, %32, %35 : vector<1x16xi32>
    %cst_12 = arith.constant 0.000000e+00 : f32
    %37 = vector.broadcast %cst_12 : f32 to vector<1x16xf32>
    %38 = arith.select %36, %26, %37 : vector<1x16xi1>, vector<1x16xf32>
    %39 = arith.addf %33, %38 : vector<1x16xf32>
    %c0_13 = arith.constant 0 : index
    %c0_14 = arith.constant 0 : index
    %40 = vector.load %arg6[%c0_13, %c0_14] : memref<1x16xf32, #tpu.memory_space<vmem>>, vector<1x16xf32>
    tpu.vector_store %arg6[%c0_13, %c0_14], %39 {strides = array<i32>} : memref<1x16xf32, #tpu.memory_space<vmem>>, vector<1x16xf32>,
    %c0_i32_15 = arith.constant 0 : i32
    %41 = arith.cmpi eq, %arg1, %c0_i32_15 : i32
    %42 = arith.extui %41 : i1 to i32
    %c0_i32_16 = arith.constant 0 : i32
    %43 = arith.cmpi ne, %42, %c0_i32_16 : i32
    scf.if %43 {
      %c0_17 = arith.constant 0 : index
      %c0_18 = arith.constant 0 : index
      %44 = vector.load %arg6[%c0_17, %c0_18] : memref<1x16xf32, #tpu.memory_space<vmem>>, vector<1x16xf32>
      %45 = vector.shape_cast %44 : vector<1x16xf32> to vector<1x1x16xf32>
      %cst_19 = arith.constant dense<0.000000e+00> : vector<1xf32>
      %46 = vector.multi_reduction <add>, %45, %cst_19 [1, 2] : vector<1x1x16xf32> to vector<1xf32>
      %47 = vector.shape_cast %46 : vector<1xf32> to vector<1x1x1xf32>
      %48 = vector.extract %47[0, 0, 0] : f32 from vector<1x1x1xf32>
      %49 = tpu.iota {dimensions = array<i32: 0>} : vector<8x128xi32>
      %50 = tpu.iota {dimensions = array<i32: 1>} : vector<8x128xi32>
      %c0_i32_20 = arith.constant 0 : i32
      %51 = vector.broadcast %c0_i32_20 : i32 to vector<8x128xi32>
      %52 = arith.cmpi eq, %49, %51 : vector<8x128xi32>
      %c0_i32_21 = arith.constant 0 : i32
      %53 = vector.broadcast %c0_i32_21 : i32 to vector<8x128xi32>
      %54 = arith.cmpi eq, %50, %53 : vector<8x128xi32>
      %55 = arith.andi %52, %54 : vector<8x128xi1>
      %cst_22 = arith.constant 0.000000e+00 : f32
      %56 = vector.broadcast %48 : f32 to vector<8x128xf32>
      %57 = vector.broadcast %cst_22 : f32 to vector<8x128xf32>
      %58 = arith.select %55, %56, %57 : vector<8x128xi1>, vector<8x128xf32>
      %c0_23 = arith.constant 0 : index
      %c0_24 = arith.constant 0 : index
      %59 = vector.load %arg5[%c0_23, %c0_24] : memref<8x128xf32, #tpu.memory_space<vmem>>, vector<8x128xf32>
      tpu.vector_store %arg5[%c0_23, %c0_24], %58 {strides = array<i32>} : memref<8x128xf32, #tpu.memory_space<vmem>>, vector<8x128xf32>,
    } else {
    }
    return
  }
  func.func @transform_0(%arg0: i32, %arg1: i32, %arg2: memref<1xi32, #tpu.memory_space<smem>>) -> (i32, i32) {
    %c1_i32 = arith.constant 1 : i32
    %0 = arith.muli %arg0, %c1_i32 : i32
    %1 = arith.addi %0, %arg1 : i32
    %c0_i32 = arith.constant 0 : i32
    %2 = arith.minsi %1, %c0_i32 : i32
    %c0_i32_0 = arith.constant 0 : i32
    %c0_i32_1 = arith.constant 0 : i32
    return %c0_i32_0, %2 : i32, i32
  }
  func.func @transform_1(%arg0: i32, %arg1: i32, %arg2: memref<1xi32, #tpu.memory_space<smem>>) -> (i32, i32) {
    %c1_i32 = arith.constant 1 : i32
    %0 = arith.muli %arg0, %c1_i32 : i32
    %1 = arith.addi %0, %arg1 : i32
    %c0_i32 = arith.constant 0 : i32
    %2 = arith.minsi %1, %c0_i32 : i32
    %c0_i32_0 = arith.constant 0 : i32
    %c0_i32_1 = arith.constant 0 : i32
    return %c0_i32_0, %2 : i32, i32
  }
  func.func @transform_2(%arg0: i32, %arg1: i32, %arg2: memref<1xi32, #tpu.memory_space<smem>>) -> (i32, i32) {
    %c0_i32 = arith.constant 0 : i32
    %c0_i32_0 = arith.constant 0 : i32
    return %arg0, %c0_i32 : i32, i32
  }
}

</mosaic_0001>

<bundles_post_ra>
// kernel: tpu_custom_call.1
= control target key start
LH: loop header
LB: loop body
LE: loop exit
PB: predicated region body
PF: predicated region fallthrough
CT: control target
= control target key end

     0   :  { %s890_s0 = inlined_call_operand.<no memory space> [shape: s32[1], index: 0, kind: input, shape index: {}]   ;;  %s891_s1 = inlined_call_operand.hbm [shape: f32[10,16], index: 1, kind: input, shape index: {}]   ;;  %s892_s2 = inlined_call_operand.vmem [shape: s32[1,16], index: 2, kind: input, shape index: {}]   ;;  %s893_s3 = inlined_call_operand.hbm [shape: f32[16,128], index: 3, kind: output, shape index: {}]  }
   0x1   :  { %8 = sst [smem:[#allocation4]] %s890_s0 }
   0x2   :  { %9 = vsyncpa [#allocation6], 0 }
   0x3   :  { %11 = vsyncpa [#allocation6 + $0x1], 0 }
   0x4   :  { %12 = vsyncpa [#allocation7], 0 }
   0x5   :  { %14 = vsyncpa [#allocation7 + $0x1], 0  ;;  %s721_s14 = smov 0   ;;  %s723_s15 = smov 0  }
   0x6   :  { %s725_s16 = smov 0   ;;  %s727_s17 = smov 0  }
   0x7   :  { %s729_s18 = smov 0   ;;  %s731_s19 = smov 0  }
   0x8   :  { %s733_s20 = smov 0   ;;  %s735_s21 = smov 0  }
   0x9 LB: > { %s442_s0 = sadd.s32 4294967295, %s692_s21   ;;  %s443_s22 = sadd.s32 4294967294, %s692_s21   ;;  %s692_s21 = sphi %s735_s21, %s20_s21   ;;  %s688_s20 = sphi %s733_s20, %s904_s20   ;;  %s684_s19 = sphi %s731_s19, %s903_s19   ;;  %s680_s18 = sphi %s729_s18, %s880_s18   ;;  %s676_s17 = sphi %s727_s17, %s902_s17   ;;  %s672_s16 = sphi %s725_s16, %s901_s16   ;;  %s668_s15 = sphi %s723_s15, %s900_s15   ;;  %s664_s14 = sphi %s721_s14, %s899_s14  }
   0xa   : > { %s32_s23 = sadd.s32 1, %s688_s20  ;;  %p661_p1 = scmp.ne.s32.totalorder %s680_s18, 0 }
   0xb   : > { %p34_p0 = scmp.ge.s32.totalorder %s32_s23, 2  ;;  %p53_p2 = scmp.eq.s32.totalorder %s692_s21, 0 }
   0xc   : > { %p58_p3 = scmp.ne.s32.totalorder %s680_s18, %s676_s17  ;;  %p59_p5 = scmp.eq.s32.totalorder %s442_s0, 0 }
   0xd   : > { %s906_s23 = smov (%p34_p0, %s32_s23), 0  ;;  %p767_p4 = por %p661_p1, %p53_p2 }
   0xe   : > { %p771_p6 = por %p59_p5, %p58_p3  ;;  %s100_s26 = ssub.s32 %s688_s20, %s906_s23 }
   0xf   : > { %p101_p7 = scmp.eq.s32.totalorder %s100_s26, 0  ;;  %s103_s27 = sadd.s32 1, %s672_s16 }
  0x10   : > { %p113_p8 = scmp.ne.s32.totalorder %s672_s16, %s668_s15  ;;  %p114_p9 = scmp.eq.s32.totalorder %s442_s0, 1 }
  0x11   : > { %s779_s28 = scalar_select %p101_p7, %s672_s16, %s103_s27  }
  0x12   : > { %p119_p10 = scmp.ne.s32.totalorder %s668_s15, %s664_s14  ;;  %p120_p11 = scmp.eq.s32.totalorder %s443_s22, 1 }
  0x13   : > { %p785_p12 = por %p114_p9, %p113_p8  ;;  %p445_p13 = scmp.ge.s32.totalorder %s692_s21, 2 }
  0x14   : > { %p790_p0 = por %p120_p11, %p119_p10  ;;  %p473_p1 = scmp.lt.s32.totalorder %s692_s21, 2 }
  0x15   : > { %s152_s6 = sshll.u32 %s891_s1, 4  ;;  %s694_s7 = smov [#allocation5]   ;;  %s153_s6 = int_to_ptr.hbm [resolvable:$true] %s152_s6 }
  0x16   : > { %s154_s8 = sshll.u32 %s694_s7, 4  ;;  %p800_p2 = pnand %p473_p1, %p767_p4  ;;  %s155_s8 = int_to_ptr.vmem [resolvable:$true] %s154_s8 }
  0x17   : > { %p448_p3 = scmp.ge.s32.totalorder %s692_s21, 1  ;;  %p174_p5 = scmp.lt.s32.totalorder %s692_s21, 3 }
  0x18   : > { %s559_s10 = sshra.s32 %s153_s6, 4  ;;  %p563_p8 = pneg %p800_p2  ;;  %s560_s10 = int_to_ptr.hbm [resolvable:$true] %s559_s10 }
  0x19   : > { %s561_s11 = scalar_lea.hbm %s560_s10, 16  ;;  %s566_s17 = scalar_lea.hbm %s891_s1, 16 }
  0x1a   : > { %p562_p7 = scmp.ne.s32.totalorder %s560_s10, %s561_s11  ;;  %p568_p11 = scmp.lt.s32.totalorder %s566_s17, %s561_s11 }
  0x1c   : > { %p564_p9 = pnand %p563_p8, %p562_p7 }
  0x1e   : > { %p565_p10 = pneg %p564_p9 }
  0x20   : > { %p570_p4 = pnand %p568_p11, %p565_p10 }
  0x22   : > { %573 = shalt.err (!%p570_p4)
}
  0x23   : > { %s695_s0 = smov 128   ;;  %s696_s22 = smov 8  }
  0x24   : > { %468 = dma.hbm_to_vmem [thread:$0]  (!%p800_p2), %s153_s6, 256, %s155_s8, [#allocation6], %s695_s0, %s695_s0, %s696_s22  }
  0x25   : > { %p175_p1 = pnand %p448_p3, %p174_p5 }
  0x26   : > { %s180_s24 = sand.u32 (!%p175_p1), 1, %s680_s18  }
  0x27   : > { %178 = sbr.rel (%p175_p1) target bundleno = 316 (0x13c), region = 28  ;;  %s449_s26 = sshll.u32 (!%p175_p1), %s180_s24, 4 }
  0x28   : > { %s181_s27 = scalar_lea.sflag (!%p175_p1), [#allocation6], %s180_s24  ;;  %s184_s4 = scalar_lea.vmem (!%p175_p1), [#allocation5], %s449_s26 }
  0x2c   : > { %654 = dma.done.wait (%p771_p6), %s181_s27, 256  }
  0x2d   : > { %656 = vsyncadd (%p771_p6), %s181_s27, 4294967040  ;;  %p216_p7 = scmp.lt.s32.totalorder %s684_s19, 0  ;;  %vm228_vm0 = vcmask 122880   ;;  %v697_v0 = vmov 0.0   ;;  %vm233_vm1 = vcmask 130048   ;;  %vm235_vm2 = vcmask 123904  }
  0x2e   : > { %229 = vst.msk [vmem:[#allocation2] sm:$0x1] %vm228_vm0, %v697_v0  ;;  %v230_v1 = vld [vmem:[%s184_s4] sm:$0xff]  ;;  %v231_v2 = vld [vmem:[%s184_s4 + $0x8] sm:$0x3]  ;;  %v261_v16 = vlaneseq  ;;  %s454_s25 = sshll.u32 %s684_s19, 4 }
  0x2f   : > { %s217_s5 = scalar_select %p216_p7, %s684_s19, 0  ;;  %v234_v3 = vsel %vm233_vm1, %v230_v1, -inf  ;;  %v236_v4 = vsel %vm235_vm2, %v231_v2, -inf  ;;  %v309_v59 = vstv %s454_s25 }
  0x30   : > { %v237_v5 = vmax.f32 %v234_v3, %v236_v4  ;;  %v833_v17 = vshrl.u32 %v261_v16, 7  ;;  %s312_s9 = sld [smem:[#allocation4]]  ;;  %v308_v58 = vand.u32 127, %v261_v16  ;;  %s209_s10 = sand.u32 1, %s668_s15  }
  0x31   : > { %s908_s5 = smov (!%p216_p7, %s217_s5), 0  ;;  %s450_s11 = sshll.u32 %s209_s10, 3 }
  0x32   : > { %s220_s8 = scalar_lea.vmem %s892_s2, %s908_s5  ;;  %v238_v6 = vrot.slane %v237_v5, 4  ;;  %v263_v24 = vadd.s32 8, %v833_v17  ;;  %v310_v0 = vadd.s32 %v309_v59, %v308_v58  ;;  %s456_s12 = sshll.u32 %s684_s19, 3  ;;  %vm333_vm10 = vcmp.eq.s32.totalorder %v833_v17, 0 }
  0x33   : > { %v550_v25 = vld [vmem:[%s220_s8] ss:$0 sm:$0xff]  ;;  %s350_s0 = scalar_lea.hbm %s893_s3, %s456_s12  ;;  %vm334_vm11 = vcmp.eq.s32.totalorder %v308_v58, 0  ;;  %s211_s22 = scalar_lea.vmem [#allocation8], %s450_s11 }
  0x34   : > { %v239_v7 = vmax.f32 %v237_v5, %v238_v6  ;;  %vm265_vm3 = vcmp.eq.s32.totalorder %v833_v17, %v550_v25  ;;  %vm266_vm4 = vcmp.eq.s32.totalorder %v263_v24, %v550_v25  ;;  %s352_s24 = sshll.u32 %s211_s22, 4  ;;  %s354_s26 = sshll.u32 %s350_s0, 4  ;;  %vm335_vm12 = vmand %vm333_vm10, %vm334_vm11  ;;  %s353_s24 = int_to_ptr.vmem [resolvable:$true] %s352_s24  ;;  %s355_s26 = int_to_ptr.hbm [resolvable:$true] %s354_s26 }
  0x35   : > { %s340_s4 = scalar_lea.sflag [#allocation7], %s209_s10  ;;  %s603_s19 = sshra.s32 %s355_s26, 4  ;;  %s604_s19 = int_to_ptr.hbm [resolvable:$true] %s603_s19 }
  0x36   : > { %v240_v8 = vrot.slane %v239_v7, 2  ;;  %v313_v3 = vstv %s312_s9  ;;  %s605_s5 = scalar_lea.hbm %s604_s19, 8  ;;  %s609_s8 = scalar_lea.hbm %s893_s3, 16 }
  0x37   : > { %vm314_vm9 = vcmp.lt.s32.totalorder %v310_v0, %v313_v3  ;;  %p606_p6 = scmp.ne.s32.totalorder %s604_s19, %s605_s5  ;;  %p610_p5 = scmp.lt.s32.totalorder %s604_s19, %s893_s3 }
  0x38   : > { %v241_v9 = vmax.f32 %v239_v7, %v240_v8  ;;  %v311_v7 = vld [vmem:[#allocation2] sm:$0x1]  ;;  %p611_p8 = scmp.lt.s32.totalorder %s609_s8, %s605_s5 }
  0x39   : > { %p607_p2 = pnand %p606_p6, %p785_p12 }
  0x3a   : > { %v242_v10 = vrot.slane %v241_v9, 1  ;;  %p612_p9 = por %p611_p8, %p610_p5 }
  0x3b   : > { %p608_p3 = pneg %p607_p2 }
  0x3c   : > { %v243_v11 = vmax.f32 %v241_v9, %v242_v10 }
  0x3d   : > { %p613_p10 = pnand %p612_p9, %p608_p3 }
  0x3e   : > { %v244_v12 = vsub.f32 %v230_v1, %v243_v11  ;;  %v245_v13 = vsub.f32 %v231_v2, %v243_v11 }
  0x40   : > { %v246_v14 = vmul.f32 1.442695, %v244_v12  ;;  %v248_v15 = vmul.f32 1.442695, %v245_v13  ;;  %v278_v18 = vsel %vm233_vm1, %v244_v12, 0.0  ;;  %v279_v19 = vsel %vm235_vm2, %v245_v13, 0.0 }
  0x41   : > { %v280_v21 = vadd.f32 %v279_v19, %v278_v18  ;;  %v267_v31 = vsel %vm265_vm3, %v244_v12, 0.0  ;;  %v268_v32 = vsel %vm266_vm4, %v245_v13, 0.0 }
  0x42   : > { %551 = vpow2.f32 %v246_v14  ;;  %v269_v36 = vsel %vm233_vm1, %v267_v31, 0.0  ;;  %v270_v37 = vsel %vm235_vm2, %v268_v32, 0.0 }
  0x43   : > { %553 = vpow2.f32 %v248_v15  ;;  %v281_v28 = vrot.slane %v280_v21, 4  ;;  %v271_v40 = vadd.f32 %v270_v37, %v269_v36 }
  0x45   : > { %v282_v33 = vadd.f32 %v281_v28, %v280_v21  ;;  %v272_v43 = vrot.slane %v271_v40, 4 }
  0x47   : > { %v283_v38 = vrot.slane %v282_v33, 2  ;;  %v273_v45 = vadd.f32 %v272_v43, %v271_v40 }
  0x48   : > { %v552_v20 = vpop.eup %551 }
  0x49   : > { %v554_v22 = vpop.eup %553  ;;  %v250_v23 = vsel %vm233_vm1, %v552_v20, 0.0  ;;  %v284_v42 = vadd.f32 %v283_v38, %v282_v33  ;;  %v274_v49 = vrot.slane %v273_v45, 2 }
  0x4a   : > { %v251_v26 = vsel %vm235_vm2, %v554_v22, 0.0 }
  0x4b   : > { %v252_v27 = vadd.f32 %v251_v26, %v250_v23  ;;  %v285_v44 = vrot.slane %v284_v42, 1  ;;  %v275_v52 = vadd.f32 %v274_v49, %v273_v45 }
  0x4d   : > { %v253_v29 = vrot.slane %v252_v27, 4  ;;  %v286_v48 = vadd.f32 %v285_v44, %v284_v42  ;;  %v276_v53 = vrot.slane %v275_v52, 1 }
  0x4f   : > { %v254_v30 = vadd.f32 %v253_v29, %v252_v27  ;;  %v277_v56 = vadd.f32 %v276_v53, %v275_v52 }
  0x51   : > { %v255_v34 = vrot.slane %v254_v30, 2 }
  0x53   : > { %v256_v35 = vadd.f32 %v255_v34, %v254_v30 }
  0x55   : > { %v257_v39 = vrot.slane %v256_v35, 1 }
  0x57   : > { %v258_v41 = vadd.f32 %v257_v39, %v256_v35 }
  0x59   : > { %555 = vlog2.f32 %v258_v41 }
  0x5f   : > { %v556_v46 = vpop.eup %555 }
  0x60   : > { %v260_v47 = vmul.f32 0.6931472, %v556_v46 }
  0x62   : > { %v288_v50 = vmul.f32 10.0, %v260_v47  ;;  %v287_v1 = vsub.f32 %v260_v47, %v277_v56 }
  0x64   : > { %v289_v51 = vsub.f32 %v288_v50, %v286_v48 }
  0x66   : > { %557 = vrcp.f32 %v289_v51  ;;  %v301_v57 = vand.u32 2147483648, %v289_v51  ;;  %vm295_vm5 = vweird.f32 %v289_v51  ;;  %v299_v61 = vand.u32 2147483647, %v289_v51 }
  0x68   : > { %v302_v63 = vor.u32 1.1754944e-38, %v301_v57  ;;  %vm300_vm8 = vcmp.eq.f32.partialorder %v299_v61, 8.507059e+37 }
  0x6c   : > { %v558_v54 = vpop.eup %557 }
  0x6d   : > { %v291_v55 = vmul.f32 %v558_v54, %v289_v51  ;;  %vm296_vm6 = vweird.f32 %v558_v54 }
  0x6e   : > { %vm297_vm7 = vmor %vm295_vm5, %vm296_vm6 }
  0x6f   : > { %v292_v60 = vsub.f32 1.0, %v291_v55 }
  0x71   : > { %v293_v62 = vmul.f32 %v558_v54, %v292_v60 }
  0x73   : > { %v294_v2 = vadd.f32 %v558_v54, %v293_v62 }
  0x75   : > { %v298_v4 = vsel %vm297_vm7, %v558_v54, %v294_v2 }
  0x76   : > { %v303_v5 = vsel %vm300_vm8, %v302_v63, %v298_v4 }
  0x77   : > { %v304_v6 = vmul.f32 %v303_v5, %v287_v1 }
  0x79   : > { %v315_v8 = vsel %vm314_vm9, %v304_v6, 0.0 }
  0x7a   : > { %v316_v9 = vadd.f32 %v315_v8, %v311_v7 }
  0x7c   : > { %318 = vst.msk [vmem:[#allocation2] sm:$0x1] %vm228_vm0, %v316_v9 }
  0x83   : > { %v322_v10 = vld [vmem:[#allocation2] sm:$0x1] }
  0x84   : > { %v323_v11 = vsel %vm228_vm0, %v322_v10, 0.0 }
  0x85   : > { %324 = vadd.xlane.f32.xlu0 %v323_v11 }
  0xf8   : > { %v325_v12 = vpop.xlane.xlu0 %324 }
  0xf9   : > { %v326_v13 = vrot.slane %v325_v12, 4 }
  0xfb   : > { %v327_v14 = vadd.f32 %v326_v13, %v325_v12 }
  0xfd   : > { %v328_v15 = vrot.slane %v327_v14, 2 }
  0xff   : > { %v329_v16 = vadd.f32 %v328_v15, %v327_v14 }
 0x101   : > { %v330_v18 = vrot.slane %v329_v16, 1 }
 0x103   : > { %v331_v19 = vadd.f32 %v330_v18, %v329_v16 }
 0x105   : > { %459 = vpush %v331_v19 }
 0x136   : > { %s460_s27 = spop %459 }
 0x137   : > { %v336_v20 = vstv %s460_s27 }
 0x138   : > { %v337_v21 = vsel %vm335_vm12, %v336_v20, 0.0 }
 0x139   : > { %338 = vst [vmem:[%s211_s22] sm:$0xff] %v337_v21 }
 0x13a   : > { %616 = shalt.err (!%p613_p10)
}
 0x13b   : > { %463 = dma.vmem_to_hbm [thread:$0]  (%p785_p12), %s353_s24, 128, %s355_s26, %s340_s4  }
 0x13c PF: > { %s366_s10 = sand.u32 1, %s664_s14   ;;  %p470_p11 = pnand %p445_p13, %p790_p0 }
 0x13d   : > { %s367_s11 = scalar_lea.sflag [#allocation7], %s366_s10 }
 0x13e   : > { %p471_p4 = pneg %p470_p11 }
 0x140   : > { %658 = dma.done.wait (%p471_p4), %s367_s11, 128  }
 0x141   : > { %660 = vsyncadd (%p471_p4), %s367_s11, 4294967168  ;;  %s20_s21 = sadd.s32 1, %s692_s21   ;;  %s899_s14 = smov %s668_s15 }
 0x142   : > { %p17_p1 = scmp.ge.s32.totalorder %s20_s21, 4   ;;  %s900_s15 = smov %s672_s16 }
 0x143   : > { %s901_s16 = smov %s779_s28  ;;  %s902_s17 = smov %s680_s18 }
 0x144   : > { %s880_s18 = smov 0   ;;  %s903_s19 = smov %s688_s20 }
 0x145   : > { %s904_s20 = smov %s906_s23  ;;  %19 = sbr.rel (!%p17_p1) target bundleno = 9 (0x9), region = 84 }
 0x14a   :  { %373 = vsyncpa [#allocation6], 1 }
 0x14b   :  { %375 = vsyncpa [#allocation6 + $0x1], 1 }
 0x14c   :  { %376 = vsyncpa [#allocation7], 1 }
 0x14d   :  { %378 = vsyncpa [#allocation7 + $0x1], 1 }

</bundles_post_ra>
